<compile_context>
chip_gen: v5e
topology: v5e:2x2
jax: 0.10.0
libtpu: 0.0.40
codegen_flags: <defaults>
</compile_context>

<pallas_src>
import functools

import jax
import jax.numpy as jnp
import numpy as np
from jax import lax
from jax.experimental import pallas as pl
from jax.experimental.pallas import tpu as pltpu


def _mha_kernel(q_ref, k_ref, v_ref,
                wq_ref, wk_ref, wv_ref, wo_ref,
                bq_ref, bk_ref, bv_ref, bo_ref,
                out_ref, attn_ref,
                k_sc, v_sc,
                *, n_heads: int, d_k: int):
    """One grid step = one (batch, query-tile) pair; all heads fused."""
    qt = pl.program_id(1)

    # --- K/V projections: full width (S, D), once per batch element ---------
    @pl.when(qt == 0)
    def _():
        x_k = k_ref[0]                                    # (S, D) f32
        x_v = v_ref[0]
        k_full = jnp.dot(x_k.astype(jnp.bfloat16), wk_ref[...],
                         preferred_element_type=jnp.float32) + bk_ref[...]
        v_full = jnp.dot(x_v.astype(jnp.bfloat16), wv_ref[...],
                         preferred_element_type=jnp.float32) + bv_ref[...]
        k_sc[...] = k_full.astype(jnp.bfloat16)           # resident bf16 (S, D)
        v_sc[...] = v_full.astype(jnp.bfloat16)

    # --- Q projection: full width (tq, D), once per query tile --------------
    # 1/sqrt(d_k) is already folded into wq / bq.
    x_q = q_ref[0]                                        # (tq, D) f32
    q_all = jnp.dot(x_q.astype(jnp.bfloat16), wq_ref[...],
                    preferred_element_type=jnp.float32) + bq_ref[...]
    q_all = q_all.astype(jnp.bfloat16)                    # (tq, D) bf16

    # --- per-head attention (static, unrolled; static lane slices) ----------
    ctx_parts = []
    for h in range(n_heads):
        lo = h * d_k
        q_h = q_all[:, lo:lo + d_k]                       # (tq, d_k) bf16
        k_h = k_sc[:, lo:lo + d_k]                        # (S,  d_k) bf16
        v_h = v_sc[:, lo:lo + d_k]                        # (S,  d_k) bf16

        # scores = (Q / sqrt(d_k)) K^T via dot_general on the last dims
        # (no XLU transpose of K).
        scores = lax.dot_general(q_h, k_h, (((1,), (1,)), ((), ())),
                                 preferred_element_type=jnp.float32)  # (tq, S)

        # Numerically stable softmax in f32.  EUP approx reciprocal on the
        # (tq, 1) denominator + one Newton step -> ~f32-exact probabilities.
        m = jnp.max(scores, axis=-1, keepdims=True)
        e = jnp.exp(scores - m)
        denom = jnp.sum(e, axis=-1, keepdims=True)
        inv = pl.reciprocal(denom, approx=True)
        inv = inv * (2.0 - denom * inv)                   # Newton refinement
        attn = e * inv                                    # (tq, S) f32

        attn_ref[0, h] = attn.astype(attn_ref.dtype)

        # Head context (f32 accumulation on the MXU).
        ctx_parts.append(jnp.dot(attn.astype(jnp.bfloat16), v_h,
                                 preferred_element_type=jnp.float32))  # (tq, d_k)

    # concat_h(ctx_h) @ Wo^T + bo as ONE lane-dense (tq, D) x (D, D) matmul.
    ctx = jnp.concatenate(ctx_parts, axis=-1)             # (tq, D) f32
    out = jnp.dot(ctx.astype(jnp.bfloat16), wo_ref[...],
                  preferred_element_type=jnp.float32) + bo_ref[...]
    out_ref[0] = out.astype(out_ref.dtype)


def interpretable_mha(query, key, value, params, *, n_heads: int,
                      q_tile: int | None = None,
                      attn_dtype=jnp.float32):
    """query/key/value: (B, S, D) float32.  Returns (output, attn_weights)."""
    B, S, D = query.shape
    assert D % n_heads == 0, "d_model must be divisible by n_heads"
    d_k = D // n_heads

    if q_tile is None:
        q_tile = S if S <= 512 else 512
    assert S % q_tile == 0, "q_tile must divide the sequence length"
    assert q_tile == S or q_tile % 8 == 0, "q_tile must be S or a multiple of 8"
    n_qt = S // q_tile

    # ---- weight layout plumbing (once, outside the kernel) ------------------
    # PyTorch nn.Linear stores W as (out, in) and computes x @ W^T + b, so we
    # pass W^T (in, out) to the kernel.  1/sqrt(d_k) is folded into Wq / bq.
    # Weights are bf16 (MXU operands); biases stay f32 (added post-accumulate).
    inv_scale = 1.0 / float(np.sqrt(d_k))
    wq = (params["wq"].T * inv_scale).astype(jnp.bfloat16)
    wk = params["wk"].T.astype(jnp.bfloat16)
    wv = params["wv"].T.astype(jnp.bfloat16)
    wo = params["wo"].T.astype(jnp.bfloat16)
    bq = (params["bq"] * inv_scale).reshape(1, D).astype(jnp.float32)
    bk = params["bk"].reshape(1, D).astype(jnp.float32)
    bv = params["bv"].reshape(1, D).astype(jnp.float32)
    bo = params["bo"].reshape(1, D).astype(jnp.float32)

    # ---- block specs ---------------------------------------------------------
    q_spec = pl.BlockSpec((1, q_tile, D), lambda b, qt: (b, qt, 0))
    kv_spec = pl.BlockSpec((1, S, D), lambda b, qt: (b, 0, 0))       # per-batch
    w_spec = pl.BlockSpec((D, D), lambda b, qt: (0, 0))              # resident
    b_spec = pl.BlockSpec((1, D), lambda b, qt: (0, 0))              # resident
    out_spec = pl.BlockSpec((1, q_tile, D), lambda b, qt: (b, qt, 0))
    attn_spec = pl.BlockSpec((1, n_heads, q_tile, S), lambda b, qt: (b, 0, qt, 0))

    # ---- VMEM budget: raise the scoped limit only when the estimated
    # double-buffered footprint exceeds the 32 MiB default (cap at 64 MiB,
    # safe on v5e/v6e/v7x). --------------------------------------------------
    def nbytes(shape, dt):
        return int(np.prod(shape)) * jnp.dtype(dt).itemsize

    est = (2 * nbytes((q_tile, D), jnp.float32)          # q block
           + 2 * 2 * nbytes((S, D), jnp.float32)         # k, v activation blocks
           + 2 * 4 * nbytes((D, D), jnp.bfloat16)        # resident weights
           + 2 * nbytes((q_tile, D), query.dtype)        # out block
           + 2 * nbytes((n_heads, q_tile, S), attn_dtype)  # attn block
           + 2 * nbytes((S, D), jnp.bfloat16)            # K/V scratch
           + 4 * nbytes((q_tile, S), jnp.float32))       # softmax temporaries
    vmem_limit = None
    if est > 24 * 1024 * 1024:
        vmem_limit = min(int(est * 1.5), 64 * 1024 * 1024)

    kernel = functools.partial(_mha_kernel, n_heads=n_heads, d_k=d_k)

    out, attn = pl.pallas_call(
        kernel,
        out_shape=(
            jax.ShapeDtypeStruct((B, S, D), query.dtype),
            jax.ShapeDtypeStruct((B, n_heads, S, S), attn_dtype),
        ),
        grid_spec=pltpu.PrefetchScalarGridSpec(
            num_scalar_prefetch=0,
            grid=(B, n_qt),
            in_specs=[
                q_spec, kv_spec, kv_spec,            # q, k, v activations
                w_spec, w_spec, w_spec, w_spec,      # Wq, Wk, Wv, Wo (bf16)
                b_spec, b_spec, b_spec, b_spec,      # bq, bk, bv, bo (f32)
            ],
            out_specs=[out_spec, attn_spec],
            scratch_shapes=[
                pltpu.VMEM((S, D), jnp.bfloat16),    # projected K (per batch)
                pltpu.VMEM((S, D), jnp.bfloat16),    # projected V (per batch)
            ],
        ),
        compiler_params=pltpu.CompilerParams(
            # Batch axis shards across TensorCores; the query-tile axis stays
            # "arbitrary" so the qt==0 K/V projection hoist is always executed
            # by the core that later consumes the scratch.
            dimension_semantics=("parallel", "arbitrary"),
            vmem_limit_bytes=vmem_limit),
    )(query, key, value, wq, wk, wv, wo, bq, bk, bv, bo)
    return out, attn


def _reference_mha(query, key, value, params, *, n_heads: int):
    """Pure-JAX reference mirroring the PyTorch forward (eval mode)."""
    B, S, D = query.shape
    d_k = D // n_heads
    scale = np.sqrt(d_k)

    def lin(x, w, b):
        return x @ w.T + b

    Q = lin(query, params["wq"], params["bq"]).reshape(B, S, n_heads, d_k).transpose(0, 2, 1, 3)
    K = lin(key, params["wk"], params["bk"]).reshape(B, S, n_heads, d_k).transpose(0, 2, 1, 3)
    V = lin(value, params["wv"], params["bv"]).reshape(B, S, n_heads, d_k).transpose(0, 2, 1, 3)
    scores = jnp.einsum("bhqd,bhkd->bhqk", Q, K) / scale
    attn = jax.nn.softmax(scores, axis=-1)
    ctx = jnp.einsum("bhqk,bhkd->bhqd", attn, V).transpose(0, 2, 1, 3).reshape(B, S, D)
    out = ctx @ params["wo"].T + params["bo"]
    return out, attn


def _make_params(key, D):
    ks = jax.random.split(key, 8)
    bound = 1.0 / np.sqrt(D)   # PyTorch nn.Linear default init range
    names = ["wq", "bq", "wk", "bk", "wv", "bv", "wo", "bo"]
    shapes = [(D, D), (D,), (D, D), (D,), (D, D), (D,), (D, D), (D,)]
    return {n: jax.random.uniform(k, s, jnp.float32, -bound, bound)
            for n, k, s in zip(names, ks, shapes)}


def _run_case(seed_key, B, S, D, H, *, q_tile=None, attn_dtype=jnp.float32,
              rtol=2e-2, atol=2e-2):
    kp, kq, kk, kv = jax.random.split(seed_key, 4)
    params = _make_params(kp, D)
    query = jax.random.normal(kq, (B, S, D), jnp.float32)
    key_in = jax.random.normal(kk, (B, S, D), jnp.float32)
    value = jax.random.normal(kv, (B, S, D), jnp.float32)

    out, attn = interpretable_mha(query, key_in, value, params, n_heads=H,
                                  q_tile=q_tile, attn_dtype=attn_dtype)
    out = jax.block_until_ready(out)
    attn = jax.block_until_ready(attn)

    ref_out, ref_attn = _reference_mha(query, key_in, value, params, n_heads=H)
    # Tolerance sized for bf16 MXU operands (f32 accumulation); softmax and
    # its (Newton-refined) reciprocal are effectively f32-exact.
    np.testing.assert_allclose(np.asarray(out, dtype=np.float32),
                               np.asarray(ref_out), rtol=rtol, atol=atol)
    np.testing.assert_allclose(np.asarray(attn, dtype=np.float32),
                               np.asarray(ref_attn), rtol=rtol, atol=atol)


if __name__ == "__main__":
    root = jax.random.PRNGKey(0)
    k_small, k_big = jax.random.split(root, 2)

    # Small shapes consistent with the module: batch=2, seq=8, d_model=32, heads=4.
    _run_case(k_small, B=2, S=8, D=32, H=4)

    # Larger shape exercising real (8,128) tiling, the query-tile grid axis,
    # the K/V projection hoist across tiles, and the bf16 attention writeback.
    _run_case(k_big, B=2, S=256, D=512, H=8, q_tile=128, attn_dtype=jnp.bfloat16)

    print("KERNEL_OK")
</pallas_src>

<mosaic_0001>
module attributes {stable_mosaic.version = 11 : i64} {
  func.func @_mha_kernel(%arg0: i32, %arg1: i32, %arg2: memref<1x8x32xf32, #tpu.memory_space<vmem>>, %arg3: memref<1x8x32xf32, #tpu.memory_space<vmem>>, %arg4: memref<1x8x32xf32, #tpu.memory_space<vmem>>, %arg5: memref<32x32xbf16, #tpu.memory_space<vmem>>, %arg6: memref<32x32xbf16, #tpu.memory_space<vmem>>, %arg7: memref<32x32xbf16, #tpu.memory_space<vmem>>, %arg8: memref<32x32xbf16, #tpu.memory_space<vmem>>, %arg9: memref<1x32xf32, #tpu.memory_space<vmem>>, %arg10: memref<1x32xf32, #tpu.memory_space<vmem>>, %arg11: memref<1x32xf32, #tpu.memory_space<vmem>>, %arg12: memref<1x32xf32, #tpu.memory_space<vmem>>, %arg13: memref<1x8x32xf32, #tpu.memory_space<vmem>>, %arg14: memref<1x4x8x8xf32, #tpu.memory_space<vmem>>, %arg15: memref<8x32xbf16, #tpu.memory_space<vmem>>, %arg16: memref<8x32xbf16, #tpu.memory_space<vmem>>) attributes {dimension_semantics = [#tpu.dimension_semantics<parallel>, #tpu.dimension_semantics<arbitrary>], iteration_bounds = array<i64: 2, 1>, scalar_prefetch = 0 : i64, scratch_operands = 2 : i64, tpu.core_type = #tpu.core_type<tc>, window_params = [{transform_indices = @transform_0, window_bounds = array<i64: 1, 8, 32>}, {transform_indices = @transform_1, window_bounds = array<i64: 1, 8, 32>}, {transform_indices = @transform_2, window_bounds = array<i64: 1, 8, 32>}, {pipeline_mode = #tpu.pipeline_mode<synchronous>, transform_indices = @transform_3, window_bounds = array<i64: 32, 32>}, {pipeline_mode = #tpu.pipeline_mode<synchronous>, transform_indices = @transform_4, window_bounds = array<i64: 32, 32>}, {pipeline_mode = #tpu.pipeline_mode<synchronous>, transform_indices = @transform_5, window_bounds = array<i64: 32, 32>}, {pipeline_mode = #tpu.pipeline_mode<synchronous>, transform_indices = @transform_6, window_bounds = array<i64: 32, 32>}, {pipeline_mode = #tpu.pipeline_mode<synchronous>, transform_indices = @transform_7, window_bounds = array<i64: 1, 32>}, {pipeline_mode = #tpu.pipeline_mode<synchronous>, transform_indices = @transform_8, window_bounds = array<i64: 1, 32>}, {pipeline_mode = #tpu.pipeline_mode<synchronous>, transform_indices = @transform_9, window_bounds = array<i64: 1, 32>}, {pipeline_mode = #tpu.pipeline_mode<synchronous>, transform_indices = @transform_10, window_bounds = array<i64: 1, 32>}, {transform_indices = @transform_11, window_bounds = array<i64: 1, 8, 32>}, {transform_indices = @transform_12, window_bounds = array<i64: 1, 4, 8, 8>}]} {
    %c0_i32 = arith.constant 0 : i32
    %0 = arith.cmpi eq, %arg1, %c0_i32 : i32
    %1 = arith.extui %0 : i1 to i32
    %c0_i32_0 = arith.constant 0 : i32
    %2 = arith.cmpi ne, %1, %c0_i32_0 : i32
    scf.if %2 {
      %c0_61 = arith.constant 0 : index
      %c0_62 = arith.constant 0 : index
      %c0_63 = arith.constant 0 : index
      %114 = vector.load %arg3[%c0_61, %c0_62, %c0_63] : memref<1x8x32xf32, #tpu.memory_space<vmem>>, vector<1x8x32xf32>
      %115 = vector.shape_cast %114 : vector<1x8x32xf32> to vector<8x32xf32>
      %c0_64 = arith.constant 0 : index
      %c0_65 = arith.constant 0 : index
      %c0_66 = arith.constant 0 : index
      %116 = vector.load %arg4[%c0_64, %c0_65, %c0_66] : memref<1x8x32xf32, #tpu.memory_space<vmem>>, vector<1x8x32xf32>
      %117 = vector.shape_cast %116 : vector<1x8x32xf32> to vector<8x32xf32>
      %118 = arith.truncf %115 : vector<8x32xf32> to vector<8x32xbf16>
      %c0_67 = arith.constant 0 : index
      %c0_68 = arith.constant 0 : index
      %119 = vector.load %arg6[%c0_67, %c0_68] : memref<32x32xbf16, #tpu.memory_space<vmem>>, vector<32x32xbf16>
      %cst_69 = arith.constant dense<0.000000e+00> : vector<8x32xf32>
      %120 = tpu.matmul %118, %119, %cst_69 {dimension_numbers = #tpu.dot_dimension_numbers<[1], [0], [0], [1], [0, 0, 1, 1], [], []>} : vector<8x32xbf16>, vector<32x32xbf16>, vector<8x32xf32> -> vector<8x32xf32>
      %c0_70 = arith.constant 0 : index
      %c0_71 = arith.constant 0 : index
      %121 = vector.load %arg10[%c0_70, %c0_71] : memref<1x32xf32, #tpu.memory_space<vmem>>, vector<1x32xf32>
      %122 = vector.broadcast %121 : vector<1x32xf32> to vector<8x32xf32>
      %123 = arith.addf %120, %122 : vector<8x32xf32>
      %124 = arith.truncf %117 : vector<8x32xf32> to vector<8x32xbf16>
      %c0_72 = arith.constant 0 : index
      %c0_73 = arith.constant 0 : index
      %125 = vector.load %arg7[%c0_72, %c0_73] : memref<32x32xbf16, #tpu.memory_space<vmem>>, vector<32x32xbf16>
      %cst_74 = arith.constant dense<0.000000e+00> : vector<8x32xf32>
      %126 = tpu.matmul %124, %125, %cst_74 {dimension_numbers = #tpu.dot_dimension_numbers<[1], [0], [0], [1], [0, 0, 1, 1], [], []>} : vector<8x32xbf16>, vector<32x32xbf16>, vector<8x32xf32> -> vector<8x32xf32>
      %c0_75 = arith.constant 0 : index
      %c0_76 = arith.constant 0 : index
      %127 = vector.load %arg11[%c0_75, %c0_76] : memref<1x32xf32, #tpu.memory_space<vmem>>, vector<1x32xf32>
      %128 = vector.broadcast %127 : vector<1x32xf32> to vector<8x32xf32>
      %129 = arith.addf %126, %128 : vector<8x32xf32>
      %130 = arith.truncf %123 : vector<8x32xf32> to vector<8x32xbf16>
      %c0_77 = arith.constant 0 : index
      %c0_78 = arith.constant 0 : index
      %131 = vector.load %arg15[%c0_77, %c0_78] : memref<8x32xbf16, #tpu.memory_space<vmem>>, vector<8x32xbf16>
      tpu.vector_store %arg15[%c0_77, %c0_78], %130 {strides = array<i32>} : memref<8x32xbf16, #tpu.memory_space<vmem>>, vector<8x32xbf16>,
      %132 = arith.truncf %129 : vector<8x32xf32> to vector<8x32xbf16>
      %c0_79 = arith.constant 0 : index
      %c0_80 = arith.constant 0 : index
      %133 = vector.load %arg16[%c0_79, %c0_80] : memref<8x32xbf16, #tpu.memory_space<vmem>>, vector<8x32xbf16>
      tpu.vector_store %arg16[%c0_79, %c0_80], %132 {strides = array<i32>} : memref<8x32xbf16, #tpu.memory_space<vmem>>, vector<8x32xbf16>,
    } else {
    }
    %c0 = arith.constant 0 : index
    %c0_1 = arith.constant 0 : index
    %c0_2 = arith.constant 0 : index
    %3 = vector.load %arg2[%c0, %c0_1, %c0_2] : memref<1x8x32xf32, #tpu.memory_space<vmem>>, vector<1x8x32xf32>
    %4 = vector.shape_cast %3 : vector<1x8x32xf32> to vector<8x32xf32>
    %5 = arith.truncf %4 : vector<8x32xf32> to vector<8x32xbf16>
    %c0_3 = arith.constant 0 : index
    %c0_4 = arith.constant 0 : index
    %6 = vector.load %arg5[%c0_3, %c0_4] : memref<32x32xbf16, #tpu.memory_space<vmem>>, vector<32x32xbf16>
    %cst = arith.constant dense<0.000000e+00> : vector<8x32xf32>
    %7 = tpu.matmul %5, %6, %cst {dimension_numbers = #tpu.dot_dimension_numbers<[1], [0], [0], [1], [0, 0, 1, 1], [], []>} : vector<8x32xbf16>, vector<32x32xbf16>, vector<8x32xf32> -> vector<8x32xf32>
    %c0_5 = arith.constant 0 : index
    %c0_6 = arith.constant 0 : index
    %8 = vector.load %arg9[%c0_5, %c0_6] : memref<1x32xf32, #tpu.memory_space<vmem>>, vector<1x32xf32>
    %9 = vector.broadcast %8 : vector<1x32xf32> to vector<8x32xf32>
    %10 = arith.addf %7, %9 : vector<8x32xf32>
    %11 = arith.truncf %10 : vector<8x32xf32> to vector<8x32xbf16>
    %12 = vector.extract_strided_slice %11 {offsets = [0, 0], sizes = [8, 8], strides = [1, 1]} : vector<8x32xbf16> to vector<8x8xbf16>
    %c0_7 = arith.constant 0 : index
    %c0_8 = arith.constant 0 : index
    %13 = vector.load %arg15[%c0_7, %c0_8] : memref<8x32xbf16, #tpu.memory_space<vmem>>, vector<8x8xbf16>
    %c0_9 = arith.constant 0 : index
    %c0_10 = arith.constant 0 : index
    %14 = vector.load %arg16[%c0_9, %c0_10] : memref<8x32xbf16, #tpu.memory_space<vmem>>, vector<8x8xbf16>
    %cst_11 = arith.constant dense<0.000000e+00> : vector<8x8xf32>
    %15 = tpu.matmul %12, %13, %cst_11 {dimension_numbers = #tpu.dot_dimension_numbers<[1], [1], [0], [0], [0, 0, 1, 0], [], []>} : vector<8x8xbf16>, vector<8x8xbf16>, vector<8x8xf32> -> vector<8x8xf32>
    %cst_12 = arith.constant dense<0xFF800000> : vector<8xf32>
    %16 = vector.multi_reduction <maximumf>, %15, %cst_12 [1] : vector<8x8xf32> to vector<8xf32>
    %17 = vector.shape_cast %16 : vector<8xf32> to vector<8x1xf32>
    %18 = vector.broadcast %17 : vector<8x1xf32> to vector<8x8xf32>
    %19 = arith.subf %15, %18 : vector<8x8xf32>
    %20 = math.exp %19 : vector<8x8xf32>
    %cst_13 = arith.constant dense<0.000000e+00> : vector<8xf32>
    %21 = vector.multi_reduction <add>, %20, %cst_13 [1] : vector<8x8xf32> to vector<8xf32>
    %22 = vector.shape_cast %21 : vector<8xf32> to vector<8x1xf32>
    %23 = tpu.reciprocal %22 {approx = true} : vector<8x1xf32> -> vector<8x1xf32>
    %24 = arith.mulf %22, %23 : vector<8x1xf32>
    %cst_14 = arith.constant 2.000000e+00 : f32
    %25 = vector.broadcast %cst_14 : f32 to vector<8x1xf32>
    %26 = arith.subf %25, %24 : vector<8x1xf32>
    %27 = arith.mulf %23, %26 : vector<8x1xf32>
    %28 = vector.broadcast %27 : vector<8x1xf32> to vector<8x8xf32>
    %29 = arith.mulf %20, %28 : vector<8x8xf32>
    %c0_15 = arith.constant 0 : index
    %c0_16 = arith.constant 0 : index
    %c0_17 = arith.constant 0 : index
    %c0_18 = arith.constant 0 : index
    %30 = vector.load %arg14[%c0_15, %c0_16, %c0_17, %c0_18] : memref<1x4x8x8xf32, #tpu.memory_space<vmem>>, vector<1x1x8x8xf32>
    %31 = vector.shape_cast %30 : vector<1x1x8x8xf32> to vector<8x8xf32>
    %32 = vector.shape_cast %29 : vector<8x8xf32> to vector<1x1x8x8xf32>
    tpu.vector_store %arg14[%c0_15, %c0_16, %c0_17, %c0_18], %32 {strides = array<i32>} : memref<1x4x8x8xf32, #tpu.memory_space<vmem>>, vector<1x1x8x8xf32>,
    %33 = arith.truncf %29 : vector<8x8xf32> to vector<8x8xbf16>
    %cst_19 = arith.constant dense<0.000000e+00> : vector<8x8xf32>
    %34 = tpu.matmul %33, %14, %cst_19 {dimension_numbers = #tpu.dot_dimension_numbers<[1], [0], [0], [1], [0, 0, 1, 1], [], []>} : vector<8x8xbf16>, vector<8x8xbf16>, vector<8x8xf32> -> vector<8x8xf32>
    %35 = vector.extract_strided_slice %11 {offsets = [0, 8], sizes = [8, 8], strides = [1, 1]} : vector<8x32xbf16> to vector<8x8xbf16>
    %c0_20 = arith.constant 0 : index
    %c8 = arith.constant 8 : index
    %36 = vector.load %arg15[%c0_20, %c8] : memref<8x32xbf16, #tpu.memory_space<vmem>>, vector<8x8xbf16>
    %c0_21 = arith.constant 0 : index
    %c8_22 = arith.constant 8 : index
    %37 = vector.load %arg16[%c0_21, %c8_22] : memref<8x32xbf16, #tpu.memory_space<vmem>>, vector<8x8xbf16>
    %cst_23 = arith.constant dense<0.000000e+00> : vector<8x8xf32>
    %38 = tpu.matmul %35, %36, %cst_23 {dimension_numbers = #tpu.dot_dimension_numbers<[1], [1], [0], [0], [0, 0, 1, 0], [], []>} : vector<8x8xbf16>, vector<8x8xbf16>, vector<8x8xf32> -> vector<8x8xf32>
    %cst_24 = arith.constant dense<0xFF800000> : vector<8xf32>
    %39 = vector.multi_reduction <maximumf>, %38, %cst_24 [1] : vector<8x8xf32> to vector<8xf32>
    %40 = vector.shape_cast %39 : vector<8xf32> to vector<8x1xf32>
    %41 = vector.broadcast %40 : vector<8x1xf32> to vector<8x8xf32>
    %42 = arith.subf %38, %41 : vector<8x8xf32>
    %43 = math.exp %42 : vector<8x8xf32>
    %cst_25 = arith.constant dense<0.000000e+00> : vector<8xf32>
    %44 = vector.multi_reduction <add>, %43, %cst_25 [1] : vector<8x8xf32> to vector<8xf32>
    %45 = vector.shape_cast %44 : vector<8xf32> to vector<8x1xf32>
    %46 = tpu.reciprocal %45 {approx = true} : vector<8x1xf32> -> vector<8x1xf32>
    %47 = arith.mulf %45, %46 : vector<8x1xf32>
    %cst_26 = arith.constant 2.000000e+00 : f32
    %48 = vector.broadcast %cst_26 : f32 to vector<8x1xf32>
    %49 = arith.subf %48, %47 : vector<8x1xf32>
    %50 = arith.mulf %46, %49 : vector<8x1xf32>
    %51 = vector.broadcast %50 : vector<8x1xf32> to vector<8x8xf32>
    %52 = arith.mulf %43, %51 : vector<8x8xf32>
    %c0_27 = arith.constant 0 : index
    %c1 = arith.constant 1 : index
    %c0_28 = arith.constant 0 : index
    %c0_29 = arith.constant 0 : index
    %53 = vector.load %arg14[%c0_27, %c1, %c0_28, %c0_29] : memref<1x4x8x8xf32, #tpu.memory_space<vmem>>, vector<1x1x8x8xf32>
    %54 = vector.shape_cast %53 : vector<1x1x8x8xf32> to vector<8x8xf32>
    %55 = vector.shape_cast %52 : vector<8x8xf32> to vector<1x1x8x8xf32>
    tpu.vector_store %arg14[%c0_27, %c1, %c0_28, %c0_29], %55 {strides = array<i32>} : memref<1x4x8x8xf32, #tpu.memory_space<vmem>>, vector<1x1x8x8xf32>,
    %56 = arith.truncf %52 : vector<8x8xf32> to vector<8x8xbf16>
    %cst_30 = arith.constant dense<0.000000e+00> : vector<8x8xf32>
    %57 = tpu.matmul %56, %37, %cst_30 {dimension_numbers = #tpu.dot_dimension_numbers<[1], [0], [0], [1], [0, 0, 1, 1], [], []>} : vector<8x8xbf16>, vector<8x8xbf16>, vector<8x8xf32> -> vector<8x8xf32>
    %58 = vector.extract_strided_slice %11 {offsets = [0, 16], sizes = [8, 8], strides = [1, 1]} : vector<8x32xbf16> to vector<8x8xbf16>
    %c0_31 = arith.constant 0 : index
    %c16 = arith.constant 16 : index
    %59 = vector.load %arg15[%c0_31, %c16] : memref<8x32xbf16, #tpu.memory_space<vmem>>, vector<8x8xbf16>
    %c0_32 = arith.constant 0 : index
    %c16_33 = arith.constant 16 : index
    %60 = vector.load %arg16[%c0_32, %c16_33] : memref<8x32xbf16, #tpu.memory_space<vmem>>, vector<8x8xbf16>
    %cst_34 = arith.constant dense<0.000000e+00> : vector<8x8xf32>
    %61 = tpu.matmul %58, %59, %cst_34 {dimension_numbers = #tpu.dot_dimension_numbers<[1], [1], [0], [0], [0, 0, 1, 0], [], []>} : vector<8x8xbf16>, vector<8x8xbf16>, vector<8x8xf32> -> vector<8x8xf32>
    %cst_35 = arith.constant dense<0xFF800000> : vector<8xf32>
    %62 = vector.multi_reduction <maximumf>, %61, %cst_35 [1] : vector<8x8xf32> to vector<8xf32>
    %63 = vector.shape_cast %62 : vector<8xf32> to vector<8x1xf32>
    %64 = vector.broadcast %63 : vector<8x1xf32> to vector<8x8xf32>
    %65 = arith.subf %61, %64 : vector<8x8xf32>
    %66 = math.exp %65 : vector<8x8xf32>
    %cst_36 = arith.constant dense<0.000000e+00> : vector<8xf32>
    %67 = vector.multi_reduction <add>, %66, %cst_36 [1] : vector<8x8xf32> to vector<8xf32>
    %68 = vector.shape_cast %67 : vector<8xf32> to vector<8x1xf32>
    %69 = tpu.reciprocal %68 {approx = true} : vector<8x1xf32> -> vector<8x1xf32>
    %70 = arith.mulf %68, %69 : vector<8x1xf32>
    %cst_37 = arith.constant 2.000000e+00 : f32
    %71 = vector.broadcast %cst_37 : f32 to vector<8x1xf32>
    %72 = arith.subf %71, %70 : vector<8x1xf32>
    %73 = arith.mulf %69, %72 : vector<8x1xf32>
    %74 = vector.broadcast %73 : vector<8x1xf32> to vector<8x8xf32>
    %75 = arith.mulf %66, %74 : vector<8x8xf32>
    %c0_38 = arith.constant 0 : index
    %c2 = arith.constant 2 : index
    %c0_39 = arith.constant 0 : index
    %c0_40 = arith.constant 0 : index
    %76 = vector.load %arg14[%c0_38, %c2, %c0_39, %c0_40] : memref<1x4x8x8xf32, #tpu.memory_space<vmem>>, vector<1x1x8x8xf32>
    %77 = vector.shape_cast %76 : vector<1x1x8x8xf32> to vector<8x8xf32>
    %78 = vector.shape_cast %75 : vector<8x8xf32> to vector<1x1x8x8xf32>
    tpu.vector_store %arg14[%c0_38, %c2, %c0_39, %c0_40], %78 {strides = array<i32>} : memref<1x4x8x8xf32, #tpu.memory_space<vmem>>, vector<1x1x8x8xf32>,
    %79 = arith.truncf %75 : vector<8x8xf32> to vector<8x8xbf16>
    %cst_41 = arith.constant dense<0.000000e+00> : vector<8x8xf32>
    %80 = tpu.matmul %79, %60, %cst_41 {dimension_numbers = #tpu.dot_dimension_numbers<[1], [0], [0], [1], [0, 0, 1, 1], [], []>} : vector<8x8xbf16>, vector<8x8xbf16>, vector<8x8xf32> -> vector<8x8xf32>
    %81 = vector.extract_strided_slice %11 {offsets = [0, 24], sizes = [8, 8], strides = [1, 1]} : vector<8x32xbf16> to vector<8x8xbf16>
    %c0_42 = arith.constant 0 : index
    %c24 = arith.constant 24 : index
    %82 = vector.load %arg15[%c0_42, %c24] : memref<8x32xbf16, #tpu.memory_space<vmem>>, vector<8x8xbf16>
    %c0_43 = arith.constant 0 : index
    %c24_44 = arith.constant 24 : index
    %83 = vector.load %arg16[%c0_43, %c24_44] : memref<8x32xbf16, #tpu.memory_space<vmem>>, vector<8x8xbf16>
    %cst_45 = arith.constant dense<0.000000e+00> : vector<8x8xf32>
    %84 = tpu.matmul %81, %82, %cst_45 {dimension_numbers = #tpu.dot_dimension_numbers<[1], [1], [0], [0], [0, 0, 1, 0], [], []>} : vector<8x8xbf16>, vector<8x8xbf16>, vector<8x8xf32> -> vector<8x8xf32>
    %cst_46 = arith.constant dense<0xFF800000> : vector<8xf32>
    %85 = vector.multi_reduction <maximumf>, %84, %cst_46 [1] : vector<8x8xf32> to vector<8xf32>
    %86 = vector.shape_cast %85 : vector<8xf32> to vector<8x1xf32>
    %87 = vector.broadcast %86 : vector<8x1xf32> to vector<8x8xf32>
    %88 = arith.subf %84, %87 : vector<8x8xf32>
    %89 = math.exp %88 : vector<8x8xf32>
    %cst_47 = arith.constant dense<0.000000e+00> : vector<8xf32>
    %90 = vector.multi_reduction <add>, %89, %cst_47 [1] : vector<8x8xf32> to vector<8xf32>
    %91 = vector.shape_cast %90 : vector<8xf32> to vector<8x1xf32>
    %92 = tpu.reciprocal %91 {approx = true} : vector<8x1xf32> -> vector<8x1xf32>
    %93 = arith.mulf %91, %92 : vector<8x1xf32>
    %cst_48 = arith.constant 2.000000e+00 : f32
    %94 = vector.broadcast %cst_48 : f32 to vector<8x1xf32>
    %95 = arith.subf %94, %93 : vector<8x1xf32>
    %96 = arith.mulf %92, %95 : vector<8x1xf32>
    %97 = vector.broadcast %96 : vector<8x1xf32> to vector<8x8xf32>
    %98 = arith.mulf %89, %97 : vector<8x8xf32>
    %c0_49 = arith.constant 0 : index
    %c3 = arith.constant 3 : index
    %c0_50 = arith.constant 0 : index
    %c0_51 = arith.constant 0 : index
    %99 = vector.load %arg14[%c0_49, %c3, %c0_50, %c0_51] : memref<1x4x8x8xf32, #tpu.memory_space<vmem>>, vector<1x1x8x8xf32>
    %100 = vector.shape_cast %99 : vector<1x1x8x8xf32> to vector<8x8xf32>
    %101 = vector.shape_cast %98 : vector<8x8xf32> to vector<1x1x8x8xf32>
    tpu.vector_store %arg14[%c0_49, %c3, %c0_50, %c0_51], %101 {strides = array<i32>} : memref<1x4x8x8xf32, #tpu.memory_space<vmem>>, vector<1x1x8x8xf32>,
    %102 = arith.truncf %98 : vector<8x8xf32> to vector<8x8xbf16>
    %cst_52 = arith.constant dense<0.000000e+00> : vector<8x8xf32>
    %103 = tpu.matmul %102, %83, %cst_52 {dimension_numbers = #tpu.dot_dimension_numbers<[1], [0], [0], [1], [0, 0, 1, 1], [], []>} : vector<8x8xbf16>, vector<8x8xbf16>, vector<8x8xf32> -> vector<8x8xf32>
    %104 = tpu.concatenate %34, %57, %80, %103 in 1 : vector<8x8xf32>, vector<8x8xf32>, vector<8x8xf32>, vector<8x8xf32> -> vector<8x32xf32>
    %105 = arith.truncf %104 : vector<8x32xf32> to vector<8x32xbf16>
    %c0_53 = arith.constant 0 : index
    %c0_54 = arith.constant 0 : index
    %106 = vector.load %arg8[%c0_53, %c0_54] : memref<32x32xbf16, #tpu.memory_space<vmem>>, vector<32x32xbf16>
    %cst_55 = arith.constant dense<0.000000e+00> : vector<8x32xf32>
    %107 = tpu.matmul %105, %106, %cst_55 {dimension_numbers = #tpu.dot_dimension_numbers<[1], [0], [0], [1], [0, 0, 1, 1], [], []>} : vector<8x32xbf16>, vector<32x32xbf16>, vector<8x32xf32> -> vector<8x32xf32>
    %c0_56 = arith.constant 0 : index
    %c0_57 = arith.constant 0 : index
    %108 = vector.load %arg12[%c0_56, %c0_57] : memref<1x32xf32, #tpu.memory_space<vmem>>, vector<1x32xf32>
    %109 = vector.broadcast %108 : vector<1x32xf32> to vector<8x32xf32>
    %110 = arith.addf %107, %109 : vector<8x32xf32>
    %c0_58 = arith.constant 0 : index
    %c0_59 = arith.constant 0 : index
    %c0_60 = arith.constant 0 : index
    %111 = vector.load %arg13[%c0_58, %c0_59, %c0_60] : memref<1x8x32xf32, #tpu.memory_space<vmem>>, vector<1x8x32xf32>
    %112 = vector.shape_cast %111 : vector<1x8x32xf32> to vector<8x32xf32>
    %113 = vector.shape_cast %110 : vector<8x32xf32> to vector<1x8x32xf32>
    tpu.vector_store %arg13[%c0_58, %c0_59, %c0_60], %113 {strides = array<i32>} : memref<1x8x32xf32, #tpu.memory_space<vmem>>, vector<1x8x32xf32>,
    return
  }
  func.func @transform_0(%arg0: i32, %arg1: i32) -> (i32, i32, i32) {
    %c0_i32 = arith.constant 0 : i32
    %c0_i32_0 = arith.constant 0 : i32
    return %arg0, %arg1, %c0_i32 : i32, i32, i32
  }
  func.func @transform_1(%arg0: i32, %arg1: i32) -> (i32, i32, i32) {
    %c0_i32 = arith.constant 0 : i32
    %c0_i32_0 = arith.constant 0 : i32
    %c0_i32_1 = arith.constant 0 : i32
    return %arg0, %c0_i32, %c0_i32_0 : i32, i32, i32
  }
  func.func @transform_2(%arg0: i32, %arg1: i32) -> (i32, i32, i32) {
    %c0_i32 = arith.constant 0 : i32
    %c0_i32_0 = arith.constant 0 : i32
    %c0_i32_1 = arith.constant 0 : i32
    return %arg0, %c0_i32, %c0_i32_0 : i32, i32, i32
  }
  func.func @transform_3(%arg0: i32, %arg1: i32) -> (i32, i32) {
    %c0_i32 = arith.constant 0 : i32
    %c0_i32_0 = arith.constant 0 : i32
    %c0_i32_1 = arith.constant 0 : i32
    return %c0_i32, %c0_i32_0 : i32, i32
  }
  func.func @transform_4(%arg0: i32, %arg1: i32) -> (i32, i32) {
    %c0_i32 = arith.constant 0 : i32
    %c0_i32_0 = arith.constant 0 : i32
    %c0_i32_1 = arith.constant 0 : i32
    return %c0_i32, %c0_i32_0 : i32, i32
  }
  func.func @transform_5(%arg0: i32, %arg1: i32) -> (i32, i32) {
    %c0_i32 = arith.constant 0 : i32
    %c0_i32_0 = arith.constant 0 : i32
    %c0_i32_1 = arith.constant 0 : i32
    return %c0_i32, %c0_i32_0 : i32, i32
  }
  func.func @transform_6(%arg0: i32, %arg1: i32) -> (i32, i32) {
    %c0_i32 = arith.constant 0 : i32
    %c0_i32_0 = arith.constant 0 : i32
    %c0_i32_1 = arith.constant 0 : i32
    return %c0_i32, %c0_i32_0 : i32, i32
  }
  func.func @transform_7(%arg0: i32, %arg1: i32) -> (i32, i32) {
    %c0_i32 = arith.constant 0 : i32
    %c0_i32_0 = arith.constant 0 : i32
    %c0_i32_1 = arith.constant 0 : i32
    return %c0_i32, %c0_i32_0 : i32, i32
  }
  func.func @transform_8(%arg0: i32, %arg1: i32) -> (i32, i32) {
    %c0_i32 = arith.constant 0 : i32
    %c0_i32_0 = arith.constant 0 : i32
    %c0_i32_1 = arith.constant 0 : i32
    return %c0_i32, %c0_i32_0 : i32, i32
  }
  func.func @transform_9(%arg0: i32, %arg1: i32) -> (i32, i32) {
    %c0_i32 = arith.constant 0 : i32
    %c0_i32_0 = arith.constant 0 : i32
    %c0_i32_1 = arith.constant 0 : i32
    return %c0_i32, %c0_i32_0 : i32, i32
  }
  func.func @transform_10(%arg0: i32, %arg1: i32) -> (i32, i32) {
    %c0_i32 = arith.constant 0 : i32
    %c0_i32_0 = arith.constant 0 : i32
    %c0_i32_1 = arith.constant 0 : i32
    return %c0_i32, %c0_i32_0 : i32, i32
  }
  func.func @transform_11(%arg0: i32, %arg1: i32) -> (i32, i32, i32) {
    %c0_i32 = arith.constant 0 : i32
    %c0_i32_0 = arith.constant 0 : i32
    return %arg0, %arg1, %c0_i32 : i32, i32, i32
  }
  func.func @transform_12(%arg0: i32, %arg1: i32) -> (i32, i32, i32, i32) {
    %c0_i32 = arith.constant 0 : i32
    %c0_i32_0 = arith.constant 0 : i32
    %c0_i32_1 = arith.constant 0 : i32
    return %arg0, %c0_i32, %arg1, %c0_i32_0 : i32, i32, i32, i32
  }
}

</mosaic_0001>

<bundles_post_ra>
// kernel: tpu_custom_call.1
= control target key start
LH: loop header
LB: loop body
LE: loop exit
PB: predicated region body
PF: predicated region fallthrough
CT: control target
= control target key end

     0   :  { %s2244_s0 = inlined_call_operand.hbm [shape: f32[2,8,32], index: 0, kind: input, shape index: {}]   ;;  %s2245_s1 = inlined_call_operand.hbm [shape: f32[2,8,32], index: 1, kind: input, shape index: {}]   ;;  %s2246_s2 = inlined_call_operand.hbm [shape: f32[2,8,32], index: 2, kind: input, shape index: {}]   ;;  %s2247_s3 = inlined_call_operand.hbm [shape: bf16[32,32], index: 3, kind: input, shape index: {}]   ;;  %s2248_s4 = inlined_call_operand.hbm [shape: bf16[32,32], index: 4, kind: input, shape index: {}]   ;;  %s2249_s5 = inlined_call_operand.hbm [shape: bf16[32,32], index: 5, kind: input, shape index: {}]   ;;  %s2250_s6 = inlined_call_operand.hbm [shape: bf16[32,32], index: 6, kind: input, shape index: {}]   ;;  %s2251_s7 = inlined_call_operand.vmem [shape: f32[1,32], index: 7, kind: input, shape index: {}]   ;;  %s2252_s8 = inlined_call_operand.vmem [shape: f32[1,32], index: 8, kind: input, shape index: {}]   ;;  %s2253_s9 = inlined_call_operand.vmem [shape: f32[1,32], index: 9, kind: input, shape index: {}]   ;;  %s2254_s10 = inlined_call_operand.vmem [shape: f32[1,32], index: 10, kind: input, shape index: {}]   ;;  %s2255_s11 = inlined_call_operand.hbm [shape: f32[2,8,32], index: 11, kind: output, shape index: {0}]   ;;  %s2256_s12 = inlined_call_operand.hbm [shape: f32[2,4,8,8], index: 12, kind: output, shape index: {1}]  }
   0x1   :  { %2270 = sst [smem:[#allocation31_spill]] %s2244_s0 }
   0x2   :  { %2271 = sst [smem:[#allocation32_spill]] %s2245_s1 }
   0x3   :  { %2272 = sst [smem:[#allocation33_spill]] %s2247_s3 }
   0x4   :  { %2273 = sst [smem:[#allocation34_spill]] %s2248_s4 }
   0x5   :  { %2274 = sst [smem:[#allocation35_spill]] %s2249_s5 }
   0x6   :  { %2275 = sst [smem:[#allocation36_spill]] %s2250_s6 }
   0x7   :  { %2276 = sst [smem:[#allocation37_spill]] %s2254_s10 }
   0x8   :  { %2277 = sst [smem:[#allocation38_spill]] %s2255_s11 }
   0x9   :  { %2278 = sst [smem:[#allocation39_spill]] %s2256_s12 }
   0xa   :  { %18 = vsyncpa [#allocation5], 0 }
   0xb   :  { %20 = vsyncpa [#allocation5 + $0x1], 0 }
   0xc   :  { %21 = vsyncpa [#allocation8], 0 }
   0xd   :  { %23 = vsyncpa [#allocation8 + $0x1], 0 }
   0xe   :  { %24 = vsyncpa [#allocation11], 0 }
   0xf   :  { %25 = vsyncpa [#allocation14], 0 }
  0x10   :  { %26 = vsyncpa [#allocation6], 0 }
  0x11   :  { %28 = vsyncpa [#allocation6 + $0x1], 0 }
  0x12   :  { %29 = vsyncpa [#allocation18], 0 }
  0x13   :  { %31 = vsyncpa [#allocation18 + $0x1], 0  ;;  %s1938_s21 = smov 0   ;;  %s1940_s22 = smov 0  }
  0x14   :  { %s1942_s23 = smov 0   ;;  %s1944_s24 = smov 0  }
  0x15   :  { %s1946_s25 = smov 0   ;;  %s1948_s26 = smov 0  }
  0x16 LB: > { %2279 = sst [smem:[#allocation25_spill]] %s1838_s21  ;;  %s1969_s27 = sadd.s32 4294967295, %s1858_s26   ;;  %s1858_s26 = sphi %s1948_s26, %s37_s26   ;;  %s1854_s25 = sphi %s1946_s25, %s2309_s25   ;;  %s1850_s24 = sphi %s1944_s24, %s2308_s24   ;;  %s1846_s23 = sphi %s1942_s23, %s2312_s23   ;;  %s1842_s22 = sphi %s1940_s22, %s2311_s22   ;;  %s1838_s21 = sphi %s1938_s21, %s2310_s21  }
  0x17   : > { %2280 = sst [smem:[#allocation26_spill]] %s1854_s25  ;;  %p1290_p0 = scmp.ge.s32.totalorder %s1858_s26, 1 }
  0x18   : > { %2281 = sst [smem:[#allocation27_spill]] %s1858_s26  ;;  %p72_p1 = scmp.eq.s32.totalorder %s1969_s27, 0 }
  0x19   : > { %p358_p2 = scmp.lt.s32.totalorder %s1858_s26, 3  ;;  %s2282_s3 = sld [smem:[#allocation33_spill]] }
  0x1a   : > { %s1860_s14 = smov [#allocation10]   ;;  %p1295_p6 = scmp.ge.s32.totalorder %s1858_s26, 2 }
  0x1b   : > { %p1977_p3 = pnand %p1290_p0, %p358_p2  ;;  %s371_s15 = sshll.u32 %s1860_s14, 4  ;;  %s372_s15 = int_to_ptr.vmem [resolvable:$true] %s371_s15 }
  0x1c   : > { %s2285_s5 = sld [smem:[#allocation35_spill]]  ;;  %s2257_s20 = smov 64  }
  0x1d   : > { %p1401_p4 = pneg %p1977_p3  ;;  %s2259_s28 = smov 4  }
  0x1e   : > { %s1863_s29 = smov [#allocation13]   ;;  %s1289_s17 = sadd.s32 4294967294, %s1858_s26  }
  0x1f   : > { %s369_s30 = sshll.u32 %s2282_s3, 4  ;;  %p1985_p5 = pnand %p1401_p4, %p72_p1  ;;  %s370_s30 = int_to_ptr.hbm [resolvable:$true] %s369_s30 }
  0x20   : > { %s399_s14 = sshll.u32 %s1863_s29, 4  ;;  %s49_s18 = sadd.s32 1, %s1854_s25  ;;  %s400_s14 = int_to_ptr.vmem [resolvable:$true] %s399_s14 }
  0x21   : > { %1404 = dma.hbm_to_vmem [thread:$0]  (!%p1985_p5), %s370_s30, 256, %s372_s15, [#allocation11], %s2257_s20, %s2257_s20, %s2259_s28  }
  0x22   : > { %s397_s19 = sshll.u32 %s2285_s5, 4  ;;  %p51_p7 = scmp.ge.s32.totalorder %s49_s18, 2  ;;  %s398_s19 = int_to_ptr.hbm [resolvable:$true] %s397_s19 }
  0x23   : > { %1410 = dma.hbm_to_vmem [thread:$0]  (!%p1985_p5), %s398_s19, 256, %s400_s14, [#allocation14], %s2257_s20, %s2257_s20, %s2259_s28  }
  0x24   : > { %s58_s3 = sadd.s32 1, %s1846_s23  ;;  %p65_p8 = scmp.ne.s32.totalorder %s1846_s23, %s1842_s22 }
  0x25   : > { %p66_p9 = scmp.eq.s32.totalorder %s1858_s26, 0  ;;  %s2314_s18 = smov (%p51_p7, %s49_s18), 0 }
  0x26   : > { %2286 = sst [smem:[#allocation28_spill]] %s2314_s18  ;;  %p71_p11 = scmp.ne.s32.totalorder %s1842_s22, %s1838_s21 }
  0x27   : > { %p2011_p10 = por %p66_p9, %p65_p8  ;;  %s53_s15 = ssub.s32 %s1854_s25, %s2314_s18 }
  0x28   : > { %p317_p12 = scmp.eq.s32.totalorder %s1969_s27, 1  ;;  %p56_p13 = scmp.eq.s32.totalorder %s53_s15, 0 }
  0x29   : > { %p2022_p0 = por %p72_p1, %p71_p11  ;;  %p323_p4 = scmp.eq.s32.totalorder %s1289_s17, 1 }
  0x2a   : > { %p2026_p2 = por %p317_p12, %p65_p8  ;;  %p1435_p9 = scmp.lt.s32.totalorder %s1858_s26, 2 }
  0x2b   : > { %s2031_s14 = scalar_select %p56_p13, %s1846_s23, %s58_s3  }
  0x2c   : > { %p2033_p7 = por %p323_p4, %p71_p11  ;;  %s2265_s28 = sand.u32 1, %s1846_s23  }
  0x2d   : > { %2290 = sst [smem:[#allocation29_spill]] %s2031_s14  ;;  %s2040_s5 = sshll.u32 %s1854_s25, 3 }
  0x2e   : > { %s2291_s20 = scalar_select %p2033_p7, 1, 0 }
  0x2f   : > { %s2044_s15 = sshll.u32 %s2265_s28, 3  ;;  %p2048_p8 = pnand %p1435_p9, %p2011_p10 }
  0x30   : > { %2292 = sst [smem:[#allocation30_spill]] %s2291_s20  ;;  %s459_s3 = sand.u32 1, %s1858_s26  }
  0x31   : > { %s2294_s1 = sld [smem:[#allocation32_spill]]  ;;  %s463_s21 = scalar_lea.vmem [#allocation7], %s2044_s15 }
  0x32   : > { %s471_s25 = sshll.u32 %s463_s21, 4  ;;  %s2295_s4 = sld [smem:[#allocation34_spill]]  ;;  %s472_s25 = int_to_ptr.vmem [resolvable:$true] %s471_s25 }
  0x33   : > { %s460_s12 = scalar_lea.sflag [#allocation8], %s459_s3  ;;  %s1864_s26 = smov [#allocation12]  }
  0x34   : > { %s385_s14 = sshll.u32 %s1864_s26, 4  ;;  %s2296_s6 = sld [smem:[#allocation36_spill]]  ;;  %s386_s14 = int_to_ptr.vmem [resolvable:$true] %s385_s14 }
  0x35   : > { %s2298_s28 = smov 64   ;;  %s1865_s3 = smov [#allocation15]  }
  0x36   : > { %s2299_s0 = sld [smem:[#allocation31_spill]]  ;;  %s443_s17 = scalar_lea.vmem [#allocation4], %s2044_s15 }
  0x37   : > { %s467_s20 = scalar_lea.hbm %s2294_s1, %s2040_s5 }
  0x38   : > { %s469_s10 = sshll.u32 %s467_s20, 4  ;;  %s383_s11 = sshll.u32 %s2295_s4, 4  ;;  %s470_s10 = int_to_ptr.hbm [resolvable:$true] %s469_s10  ;;  %s384_s11 = int_to_ptr.hbm [resolvable:$true] %s383_s11 }
  0x39   : > { %1420 = dma.hbm_to_vmem [thread:$0]  (!%p2048_p8), %s470_s10, 128, %s472_s25, %s460_s12  }
  0x3a   : > { %s411_s21 = sshll.u32 %s2296_s6, 4  ;;  %s2297_s20 = smov 4   ;;  %s412_s21 = int_to_ptr.hbm [resolvable:$true] %s411_s21 }
  0x3b   : > { %1407 = dma.hbm_to_vmem [thread:$0]  (!%p1985_p5), %s384_s11, 256, %s386_s14, [#allocation11], %s2298_s28, %s2298_s28, %s2297_s20  }
  0x3c   : > { %s413_s10 = sshll.u32 %s1865_s3, 4  ;;  %s448_s26 = scalar_lea.hbm %s2299_s0, %s2040_s5  ;;  %s414_s10 = int_to_ptr.vmem [resolvable:$true] %s413_s10 }
  0x3d   : > { %1413 = dma.hbm_to_vmem [thread:$0]  (!%p1985_p5), %s412_s21, 256, %s414_s10, [#allocation14], %s2298_s28, %s2298_s28, %s2297_s20  }
  0x3e   : > { %s450_s1 = sshll.u32 %s448_s26, 4  ;;  %s452_s4 = sshll.u32 %s443_s17, 4  ;;  %s451_s1 = int_to_ptr.hbm [resolvable:$true] %s450_s1  ;;  %s453_s4 = int_to_ptr.vmem [resolvable:$true] %s452_s4 }
  0x3f   : > { %s2300_s6 = sand.u32 1, %s1846_s23   ;;  %s486_s25 = scalar_lea.hbm %s2246_s2, %s2040_s5 }
  0x40   : > { %s440_s11 = scalar_lea.sflag [#allocation5], %s2300_s6  ;;  %s488_s30 = sshll.u32 %s486_s25, 4  ;;  %s489_s30 = int_to_ptr.hbm [resolvable:$true] %s488_s30 }
  0x41   : > { %1417 = dma.hbm_to_vmem [thread:$0]  (!%p2048_p8), %s451_s1, 128, %s453_s4, %s440_s11  }
  0x42   : > { %s482_s0 = scalar_lea.vmem [#allocation9], %s2044_s15  ;;  %499 = sbr.rel (%p1977_p3) target bundleno = 1162 (0x48a), region = 64 }
  0x43   : > { %s490_s16 = sshll.u32 %s482_s0, 4  ;;  %s2095_s21 = sand.u32 (!%p1977_p3), 1, %s1842_s22   ;;  %s491_s16 = int_to_ptr.vmem [resolvable:$true] %s490_s16 }
  0x44   : > { %1423 = dma.hbm_to_vmem [thread:$0]  (!%p2048_p8), %s489_s30, 128, %s491_s16, %s460_s12  }
  0x45   : > { %s2098_s4 = sshll.u32 (!%p1977_p3), %s2095_s21, 3  ;;  %s502_s5 = scalar_lea.sflag (!%p1977_p3), [#allocation5], %s2095_s21 }
  0x46   : > { %s505_s6 = scalar_lea.vmem (!%p1977_p3), [#allocation4], %s2098_s4 }
  0x47   : > { %1813 = dma.done.wait (%p2022_p0), %s502_s5, 128  }
  0x48   : > { %1815 = vsyncadd (%p2022_p0), %s502_s5, 4294967168  ;;  %s511_s0 = sand.u32 1, %s1969_s27   ;;  %s515_s13 = scalar_lea.vmem [#allocation7], %s2098_s4 }
  0x49   : > { %s512_s12 = scalar_lea.sflag [#allocation8], %s511_s0 }
  0x4a   : > { %1817 = dma.done.wait (%p2022_p0), %s512_s12, 256  }
  0x4b   : > { %1819 = vsyncadd (%p2022_p0), %s512_s12, 4294967040  ;;  %s525_s18 = scalar_lea.vmem [#allocation9], %s2098_s4 }
  0x4c   : > { %1821 = dma.done.wait (%p72_p1), [#allocation11], 512  }
  0x4d   : > { %1823 = vsyncadd (%p72_p1), [#allocation11], 4294966784 }
  0x4e   : > { %1825 = dma.done.wait (%p72_p1), [#allocation14], 512  }
  0x4f   : > { %1827 = vsyncadd (%p72_p1), [#allocation14], 4294966784  ;;  %v1367_v0 = vld [vmem:[#allocation12 + $0x8] sm:$0xff]  ;;  %v1371_v1 = vld [vmem:[#allocation10 + $0x8] sm:$0xff]  ;;  %vm630_vm0 = vcmask 261120   ;;  %vm685_vm1 = vcmask 257024  }
  0x50   : > { %v1366_v2 = vld [vmem:[#allocation12] sm:$0xff]  ;;  %v1370_v3 = vld [vmem:[#allocation10] sm:$0xff]  ;;  %640 = vmatpush.bf16.msra.mxu0 %v1367_v0  ;;  %721 = vmatpush.bf16.msra.mxu2 %v1371_v1  ;;  %v1502_v8 = vld [vmem:[%s2252_s8] ss:$0 sm:$0xff]  ;;  %vm731_vm2 = vcmask 64512   ;;  %s1866_s28 = smov 112  }
  0x51   : > { %v607_v4 = vld [vmem:[%s515_s13] sm:$0xff]  ;;  %v689_v5 = vld [vmem:[%s505_s6] sm:$0xff]  ;;  %s1867_s10 = smov 120   ;;  %s1868_s26 = smov 104   ;;  %vm770_vm3 = vcmask 1043456   ;;  %vm1010_vm4 = vcmask 130048  }
  0x52   : > { %v609_v6 = vpack.c.bf16 %v607_v4, %v607_v4  ;;  %v690_v7 = vpack.c.bf16 %v689_v5, %v689_v5  ;;  %v1503_v12 = vld [vmem:[%s2251_s7] ss:$0 sm:$0xff]  ;;  %v1368_v32 = vld [vmem:[#allocation13] sm:$0xff]  ;;  %v608_v33 = vld [vmem:[%s525_s18] sm:$0xff]  ;;  %s1311_s11 = sshll.u32 %s2095_s21, 5  ;;  %s1869_s3 = smov 8  }
  0x53   : > { %v1369_v31 = vld [vmem:[#allocation13 + $0x8] sm:$0xff]  ;;  %v647_v34 = vpack.c.bf16 %v608_v33, %v608_v33  ;;  %s2161_s14 = scalar_lea.vmem [#allocation17], %s1311_s11  ;;  %s1870_s25 = smov 24   ;;  %vm1012_vm5 = vcmask 195584  }
  0x54   : > { %641 = vmatpush.bf16.msra.mxu0 %v1366_v2  ;;  %722 = vmatpush.bf16.msra.mxu2 %v1370_v3  ;;  %v1504_v47 = vld [vmem:[%s2253_s9] ss:$0 sm:$0xff]  ;;  %s1871_s30 = smov 16   ;;  %s1374_s16 = sshll.u32 %s1850_s24, 5 }
  0x55   : > { %677 = vmatpush.bf16.msra.mxu1 %v1369_v31  ;;  %s2301_s0 = sld [smem:[#allocation39_spill]]  ;;  %s1086_s13 = sshll.u32 %s2161_s14, 4  ;;  %s1087_s13 = int_to_ptr.vmem [resolvable:$true] %s1086_s13 }
  0x56   : > { %s1058_s19 = scalar_lea.sflag [#allocation18], %s2095_s21 }
  0x57   : > { %1320 = vmatmul.msk.bf16.vlgmr.msra.gmra.mxu0 %vm630_vm0, %v609_v6  ;;  %1338 = vmatmul.msk.bf16.vlgmr.msra.gmra.mxu2 %vm630_vm0, %v690_v7 }
  0x59   : > { %678 = vmatpush.bf16.msra.mxu1 %v1368_v32 }
  0x5b   : > { %s1085_s12 = scalar_lea.hbm %s2301_s0, %s1374_s16 }
  0x5c   : > { %1329 = vmatmul.msk.bf16.vlgmr.msra.gmra.mxu1 %vm630_vm0, %v647_v34  ;;  %s1088_s18 = sshll.u32 %s1085_s12, 4  ;;  %s1089_s18 = int_to_ptr.hbm [resolvable:$true] %s1088_s18 }
  0x5d   : > { %s1746_s27 = sshra.s32 %s1089_s18, 4  ;;  %s1747_s27 = int_to_ptr.hbm [resolvable:$true] %s1746_s27 }
  0x5e   : > { %s1748_s15 = scalar_lea.hbm %s1747_s27, 32  ;;  %p1753_p10 = scmp.lt.s32.totalorder %s1747_s27, %s2301_s0 }
  0x5f   : > { %p1749_p1 = scmp.ne.s32.totalorder %s1747_s27, %s1748_s15 }
  0x61   : > { %p1750_p3 = pnand %p1749_p1, %p2026_p2 }
  0x63   : > { %p1751_p5 = pneg %p1750_p3 }
  0xd4   : > { %v643_v9 = vpop.f32.mrf.mxu0 }
  0xd5   : > { %v644_v10 = vadd.f32 %v1502_v8, %v643_v9 }
  0xd7   : > { %v684_v11 = vpack.c.bf16 %v644_v10, %v644_v10 }
  0xd9   : > { %686 = vst.msk [vmem:[#allocation2] sm:$0xf] %vm685_vm1, %v684_v11  ;;  %v680_v48 = vpop.f32.mrf.mxu1 }
  0xda   : > { %v724_v13 = vpop.f32.mrf.mxu2  ;;  %v681_v49 = vadd.f32 %v1504_v47, %v680_v48 }
  0xdb   : > { %v725_v14 = vadd.f32 %v1503_v12, %v724_v13 }
  0xdc   : > { %v645_v15 = vpop.f32.mrf.mxu0  ;;  %v687_v50 = vpack.c.bf16 %v681_v49, %v681_v49 }
  0xdd   : > { %v728_v16 = vpack.c.bf16 %v725_v14, %v725_v14 }
  0xde   : > { %688 = vst.msk [vmem:[#allocation3] sm:$0xf] %vm685_vm1, %v687_v50 }
  0xdf   : > { %v790_v17 = vunpack.c.l.b16 %v728_v16 }
  0xe0   : > { %v729_v18 = vld [vmem:[#allocation2] sm:$0xf] }
  0xe1   : > { %v859_v19 = vld [vmem:[#allocation2] sm:$0xf]  ;;  %v791_v21 = vpack.c.b16 %v790_v17, %v790_v17  ;;  %v736_v22 = vsel %vm731_vm2, %v729_v18, 0  ;;  %v682_v51 = vpop.f32.mrf.mxu1 }
  0xe2   : > { %v787_v20 = vld [vmem:[#allocation2] sm:$0xf]  ;;  %v864_v23 = vunpack.c.l.b16 %v859_v19  ;;  %745 = vmatpush.bf16.xpose.msra.mxu3 %v736_v22  ;;  %v726_v25 = vpop.f32.mrf.mxu2 }
  0xe3   : > { %v795_v24 = vunpack.c.l.b16 %v787_v20  ;;  %861 = vrot.lane.b32.xlu2 %v791_v21, %s1866_s28  ;;  %v928_v28 = vld [vmem:[#allocation2] sm:$0xf] }
  0xe4   : > { %v865_v26 = vpack.c.b16 %v864_v23, %v864_v23  ;;  %v933_v29 = vunpack.c.l.b16 %v928_v28 }
  0xe5   : > { %v796_v27 = vpack.c.b16 %v795_v24, %v795_v24  ;;  %v730_v52 = vld [vmem:[#allocation3] sm:$0xf] }
  0xe6   : > { %866 = vrot.lane.b32.xlu1 %v865_v26, %s1866_s28  ;;  %v934_v30 = vpack.c.b16 %v933_v29, %v933_v29  ;;  %v772_v53 = vsel %vm770_vm3, %v730_v52, 0  ;;  %v788_v4 = vld [vmem:[#allocation3] sm:$0xf] }
  0xe7   : > { %797 = vrot.lane.b32.xlu0 %v796_v27, %s1867_s10  ;;  %781 = vmatpush.bf16.msrb.mxu0 %v772_v53  ;;  %v836_v5 = vunpack.c.l.b16 %v788_v4  ;;  %v929_v31 = vld [vmem:[#allocation3] sm:$0xf] }
  0xe8   : > { %v974_v32 = vunpack.c.l.b16 %v929_v31  ;;  %v860_v34 = vld [vmem:[#allocation3] sm:$0xf] }
  0xe9   : > { %1339 = vmatmul.msk.bf16.vlgmr.msra.gmra.mxu3 %vm731_vm2, %v728_v16  ;;  %v837_v6 = vpack.c.b16 %v836_v5, %v836_v5 }
  0xea   : > { %v975_v33 = vpack.c.b16 %v974_v32, %v974_v32 }
  0xeb   : > { %930 = vrot.lane.b32.xlu2 %v791_v21, %s1868_s26 }
  0xee   : > { %935 = vrot.lane.b32.xlu1 %v934_v30, %s1868_s26 }
  0xef   : > { %792 = vrot.lane.b32.xlu0 %v791_v21, %s1867_s10 }
 0x13d   : > { %v862_v39 = vpop.permute.xlu2 %861 }
 0x145   : > { %v931_v45 = vpop.permute.xlu2 %930 }
 0x158   : > { %v867_v35 = vpop.permute.xlu1 %866 }
 0x159   : > { %v798_v36 = vpop.permute.xlu0 %797  ;;  %v872_v38 = vsel %vm731_vm2, %v867_v35, 0  ;;  %v905_v35 = vunpack.c.l.b16 %v860_v34 }
 0x15a   : > { %v803_v37 = vsel %vm731_vm2, %v798_v36, 0  ;;  %881 = vmatpush.bf16.xpose.msrb.mxu3 %v872_v38 }
 0x15b   : > { %812 = vmatpush.bf16.xpose.msrb.mxu1 %v803_v37  ;;  %v906_v36 = vpack.c.b16 %v905_v35, %v905_v35 }
 0x160   : > { %v936_v40 = vpop.permute.xlu1 %935 }
 0x161   : > { %v793_v41 = vpop.permute.xlu0 %792  ;;  %v941_v42 = vsel %vm731_vm2, %v936_v40, 0  ;;  %1344 = vmatmul.msk.bf16.vlgmr.msrb.gmra.mxu3 %vm731_vm2, %v862_v39 }
 0x162   : > { %1341 = vmatmul.msk.bf16.vlgmr.msrb.gmra.mxu1 %vm731_vm2, %v793_v41 }
 0x163   : > { %950 = vmatpush.bf16.xpose.msra.mxu1 %v941_v42 }
 0x16c   : > { %v747_v43 = vpop.f32.mrf.mxu3 }
 0x16d   : > { %v751_v44 = vsel %vm731_vm2, %v747_v43, -inf }
 0x16e   : > { %752 = vmax.xlane.f32.xlu1 %v751_v44 }
 0x172   : > { %1347 = vmatmul.msk.bf16.vlgmr.msra.gmra.mxu1 %vm731_vm2, %v931_v45 }
 0x174   : > { %v749_v46 = vpop.f32.mrf.mxu3 }
 0x1df   : > { %v814_v54 = vpop.f32.mrf.mxu1 }
 0x1e0   : > { %v818_v55 = vsel %vm731_vm2, %v814_v54, -inf }
 0x1e1   : > { %819 = vmax.xlane.f32.xlu0 %v818_v55  ;;  %v753_v56 = vpop.xlane.xlu1 %752 }
 0x1e2   : > { %v754_v57 = vsub.f32 %v747_v43, %v753_v56 }
 0x1e4   : > { %v883_v58 = vpop.f32.mrf.mxu3  ;;  %v755_v59 = vmul.f32 1.442695, %v754_v57 }
 0x1e5   : > { %v887_v3 = vsel %vm731_vm2, %v883_v58, -inf }
 0x1e6   : > { %1506 = vpow2.f32 %v755_v59 }
 0x1e7   : > { %v816_v60 = vpop.f32.mrf.mxu1 }
 0x1ec   : > { %v885_v61 = vpop.f32.mrf.mxu3  ;;  %v1507_v62 = vpop.eup %1506 }
 0x1ed   : > { %v757_v0 = vsel %vm731_vm2, %v1507_v62, 0.0 }
 0x1ee   : > { %758 = vadd.xlane.f32.xlu1 %v757_v0 }
 0x1ef   : > { %v952_v63 = vpop.f32.mrf.mxu1 }
 0x1f0   : > { %v956_v1 = vsel %vm731_vm2, %v952_v63, -inf }
 0x1f1   : > { %957 = vmax.xlane.f32.xlu2 %v956_v1 }
 0x1f7   : > { %v954_v2 = vpop.f32.mrf.mxu1 }
 0x1f9   : > { %888 = vmax.xlane.f32.xlu2 %v887_v3 }
 0x211   : > { %838 = vrot.lane.b32.xlu2 %v837_v6, %s1867_s10  ;;  %v1373_v6 = vld [vmem:[#allocation15 + $0x8] sm:$0xff]  ;;  %s1752_s10 = scalar_lea.hbm %s2301_s0, 64 }
 0x212   : > { %1044 = vmatpush.bf16.msra.mxu3 %v1373_v6  ;;  %p1754_p11 = scmp.lt.s32.totalorder %s1752_s10, %s1748_s15 }
 0x214   : > { %p1755_p12 = por %p1754_p11, %p1753_p10 }
 0x216   : > { %p1756_p13 = pnand %p1755_p12, %p1751_p5 }
 0x254   : > { %v820_v7 = vpop.xlane.xlu0 %819 }
 0x255   : > { %v821_v8 = vsub.f32 %v814_v54, %v820_v7  ;;  %v1372_v7 = vld [vmem:[#allocation15] sm:$0xff] }
 0x256   : > { %1045 = vmatpush.bf16.msra.mxu3 %v1372_v7 }
 0x257   : > { %v822_v9 = vmul.f32 1.442695, %v821_v8 }
 0x259   : > { %1508 = vpow2.f32 %v822_v9 }
 0x25f   : > { %v1509_v10 = vpop.eup %1508 }
 0x260   : > { %v824_v11 = vsel %vm731_vm2, %v1509_v10, 0.0 }
 0x261   : > { %825 = vadd.xlane.f32.xlu0 %v824_v11  ;;  %v759_v12 = vpop.xlane.xlu1 %758 }
 0x262   : > { %1510 = vrcp.f32 %v759_v12 }
 0x264   : > { %v958_v13 = vpop.xlane.xlu2 %957 }
 0x265   : > { %v959_v14 = vsub.f32 %v952_v63, %v958_v13 }
 0x267   : > { %v960_v15 = vmul.f32 1.442695, %v959_v14 }
 0x268   : > { %v1511_v16 = vpop.eup %1510 }
 0x269   : > { %1512 = vpow2.f32 %v960_v15  ;;  %v761_v17 = vmul.f32 %v1511_v16, %v759_v12 }
 0x26b   : > { %v762_v19 = vsub.f32 2.0, %v761_v17 }
 0x26c   : > { %v889_v18 = vpop.xlane.xlu2 %888 }
 0x26d   : > { %v890_v20 = vsub.f32 %v883_v58, %v889_v18  ;;  %v763_v22 = vmul.f32 %v1511_v16, %v762_v19 }
 0x26f   : > { %v1513_v21 = vpop.eup %1512  ;;  %v891_v23 = vmul.f32 1.442695, %v890_v20  ;;  %v764_v25 = vmul.f32 %v1507_v62, %v763_v22 }
 0x270   : > { %v962_v24 = vsel %vm731_vm2, %v1513_v21, 0.0 }
 0x271   : > { %1514 = vpow2.f32 %v891_v23  ;;  %963 = vadd.xlane.f32.xlu0 %v962_v24  ;;  %765 = vst.msk [vmem:[%s2161_s14] sm:$0xff] %vm731_vm2, %v764_v25  ;;  %v766_v26 = vpack.c.bf16 %v764_v25, %v764_v25 }
 0x273   : > { %1340 = vmatmul.msk.bf16.vlgmr.msrb.gmra.mxu0 %vm731_vm2, %v766_v26 }
 0x274   : > { %v839_v27 = vpop.permute.xlu2 %838 }
 0x275   : > { %v844_v28 = vsel %vm770_vm3, %v839_v27, 0 }
 0x276   : > { %853 = vmatpush.bf16.msrb.mxu2 %v844_v28 }
 0x277   : > { %v1515_v29 = vpop.eup %1514 }
 0x278   : > { %v893_v30 = vsel %vm731_vm2, %v1515_v29, 0.0 }
 0x279   : > { %894 = vadd.xlane.f32.xlu1 %v893_v30 }
 0x285   : > { %976 = vrot.lane.b32.xlu0 %v975_v33, %s1868_s26 }
 0x292   : > { %907 = vrot.lane.b32.xlu1 %v906_v36, %s1866_s28 }
 0x2d4   : > { %v826_v37 = vpop.xlane.xlu0 %825 }
 0x2d5   : > { %1516 = vrcp.f32 %v826_v37 }
 0x2db   : > { %v1517_v38 = vpop.eup %1516 }
 0x2dc   : > { %v828_v39 = vmul.f32 %v1517_v38, %v826_v37 }
 0x2de   : > { %v829_v40 = vsub.f32 2.0, %v828_v39 }
 0x2e0   : > { %v830_v41 = vmul.f32 %v1517_v38, %v829_v40 }
 0x2e2   : > { %v831_v42 = vmul.f32 %v1509_v10, %v830_v41 }
 0x2e4   : > { %1342 = vst.msk [vmem:[%s2161_s14 + $0x8] sm:$0xff] %vm731_vm2, %v831_v42  ;;  %v964_v43 = vpop.xlane.xlu0 %963  ;;  %v834_v44 = vpack.c.bf16 %v831_v42, %v831_v42 }
 0x2e5   : > { %1518 = vrcp.f32 %v964_v43 }
 0x2e6   : > { %1343 = vmatmul.msk.bf16.vlgmr.msrb.gmra.mxu2 %vm731_vm2, %v834_v44 }
 0x2eb   : > { %v1519_v45 = vpop.eup %1518 }
 0x2ec   : > { %v966_v46 = vmul.f32 %v1519_v45, %v964_v43  ;;  %v895_v47 = vpop.xlane.xlu1 %894 }
 0x2ed   : > { %1520 = vrcp.f32 %v895_v47 }
 0x2ee   : > { %v967_v48 = vsub.f32 2.0, %v966_v46 }
 0x2f0   : > { %v968_v49 = vmul.f32 %v1519_v45, %v967_v48  ;;  %v783_v51 = vpop.f32.mrf.mxu0 }
 0x2f2   : > { %v969_v50 = vmul.f32 %v1513_v21, %v968_v49 }
 0x2f3   : > { %v1521_v52 = vpop.eup %1520 }
 0x2f4   : > { %1348 = vst.msk [vmem:[%s2161_s14 + $0x18] sm:$0xff] %vm731_vm2, %v969_v50  ;;  %v897_v53 = vmul.f32 %v1521_v52, %v895_v47  ;;  %v972_v58 = vpack.c.bf16 %v969_v50, %v969_v50 }
 0x2f6   : > { %v898_v54 = vsub.f32 2.0, %v897_v53 }
 0x2f7   : > { %v977_v55 = vpop.permute.xlu0 %976 }
 0x2f8   : > { %v899_v56 = vmul.f32 %v1521_v52, %v898_v54  ;;  %v982_v57 = vsel %vm770_vm3, %v977_v55, 0  ;;  %v785_v60 = vpop.f32.mrf.mxu0 }
 0x2f9   : > { %991 = vmatpush.bf16.msra.mxu2 %v982_v57 }
 0x2fa   : > { %v900_v59 = vmul.f32 %v1515_v29, %v899_v56 }
 0x2fc   : > { %1345 = vst.msk [vmem:[%s2161_s14 + $0x10] sm:$0xff] %vm731_vm2, %v900_v59  ;;  %1349 = vmatmul.msk.bf16.vlgmr.msra.gmra.mxu2 %vm731_vm2, %v972_v58  ;;  %v903_v63 = vpack.c.bf16 %v900_v59, %v900_v59 }
 0x304   : > { %v908_v61 = vpop.permute.xlu1 %907 }
 0x305   : > { %v913_v62 = vsel %vm770_vm3, %v908_v61, 0 }
 0x306   : > { %922 = vmatpush.bf16.msra.mxu0 %v913_v62 }
 0x309   : > { %1346 = vmatmul.msk.bf16.vlgmr.msra.gmra.mxu0 %vm731_vm2, %v903_v63 }
 0x369   : > { %v855_v0 = vpop.f32.mrf.mxu2 }
 0x36a   : > { %998 = vrot.lane.b32.xlu2 %v855_v0, %s1869_s3 }
 0x371   : > { %v857_v1 = vpop.f32.mrf.mxu2 }
 0x37f   : > { %v993_v2 = vpop.f32.mrf.mxu2 }
 0x380   : > { %1006 = vrot.lane.b32.xlu2 %v993_v2, %s1870_s25 }
 0x386   : > { %v924_v3 = vpop.f32.mrf.mxu0 }
 0x387   : > { %1002 = vrot.lane.b32.xlu0 %v924_v3, %s1871_s30  ;;  %v995_v4 = vpop.f32.mrf.mxu2 }
 0x38e   : > { %v926_v5 = vpop.f32.mrf.mxu0 }
 0x3c4   : > { %v999_v8 = vpop.permute.xlu2 %998 }
 0x3c5   : > { %v1009_v9 = vsel %vm731_vm2, %v783_v51, %v999_v8 }
 0x3da   : > { %v1007_v11 = vpop.permute.xlu2 %1006 }
 0x3f9   : > { %v1003_v10 = vpop.permute.xlu0 %1002 }
 0x3fa   : > { %v1011_v12 = vsel %vm1010_vm4, %v1009_v9, %v1003_v10 }
 0x3fb   : > { %v1013_v13 = vsel %vm1012_vm5, %v1011_v12, %v1007_v11 }
 0x3fc   : > { %v1014_v14 = vpack.c.bf16 %v1013_v13, %v1013_v13 }
 0x3fe   : > { %1358 = vmatmul.msk.bf16.vlgmr.msra.gmra.mxu3 %vm630_vm0, %v1014_v14 }
 0x3ff   : > { %1759 = shalt.err (!%p1756_p13)
}
 0x400   : > { %s1872_s17 = smov 128   ;;  %s1361_s11 = sshll.u32 %s1850_s24, 3 }
 0x401   : > { %1398 = dma.vmem_to_hbm [thread:$0]  (%p2026_p2), %s1087_s13, 512, %s1089_s18, %s1058_s19, %s1872_s17, %s1872_s17, %s1869_s3  }
 0x402   : > { %s2302_s30 = sld [smem:[#allocation38_spill]]  ;;  %s594_s27 = scalar_lea.vmem [#allocation16], %s2098_s4 }
 0x403   : > { %s2303_s12 = sld [smem:[#allocation37_spill]]  ;;  %s1071_s15 = sshll.u32 %s594_s27, 4  ;;  %s1072_s15 = int_to_ptr.vmem [resolvable:$true] %s1071_s15 }
 0x404   : > { %s1053_s3 = scalar_lea.sflag [#allocation6], %s2095_s21 }
 0x408   : > { %s1069_s16 = scalar_lea.hbm %s2302_s30, %s1361_s11  ;;  %s1780_s4 = scalar_lea.hbm %s2302_s30, 16 }
 0x409   : > { %v1505_v15 = vld [vmem:[%s2303_s12] ss:$0 sm:$0xff]  ;;  %s1073_s20 = sshll.u32 %s1069_s16, 4  ;;  %s1074_s20 = int_to_ptr.hbm [resolvable:$true] %s1073_s20 }
 0x40a   : > { %s1774_s24 = sshra.s32 %s1074_s20, 4  ;;  %s1775_s24 = int_to_ptr.hbm [resolvable:$true] %s1774_s24 }
 0x40b   : > { %s1776_s13 = scalar_lea.hbm %s1775_s24, 8  ;;  %p1781_p8 = scmp.lt.s32.totalorder %s1775_s24, %s2302_s30 }
 0x40c   : > { %p1777_p0 = scmp.ne.s32.totalorder %s1775_s24, %s1776_s13  ;;  %p1782_p1 = scmp.lt.s32.totalorder %s1780_s4, %s1776_s13 }
 0x40e   : > { %p1778_p4 = pnand %p1777_p0, %p2026_p2  ;;  %p1783_p3 = por %p1782_p1, %p1781_p8 }
 0x410   : > { %p1779_p9 = pneg %p1778_p4 }
 0x412   : > { %p1784_p5 = pnand %p1783_p3, %p1779_p9 }
 0x481   : > { %v1047_v16 = vpop.f32.mrf.mxu3 }
 0x482   : > { %v1048_v17 = vadd.f32 %v1505_v15, %v1047_v16 }
 0x484   : > { %1051 = vst.msk [vmem:[%s594_s27] sm:$0xff] %vm630_vm0, %v1048_v17 }
 0x485   : > { %1787 = shalt.err (!%p1784_p5)
}
 0x486   : > { %1397 = dma.vmem_to_hbm [thread:$0]  (%p2026_p2), %s1072_s15, 128, %s1074_s20, %s1053_s3  }
 0x489   : > { %v1049_v18 = vpop.f32.mrf.mxu3 }
 0x48a PF: > { %s2304_s21 = sld [smem:[#allocation25_spill]]  ;;  %p1425_p10 = pnand %p1295_p6, %p2033_p7 }
 0x48b   : > { %s2306_s1 = sld [smem:[#allocation27_spill]] }
 0x48c   : > { %p1426_p11 = pneg %p1425_p10 }
 0x490   : > { %s1103_s17 = sand.u32 1, %s2304_s21  }
 0x491   : > { %s1104_s11 = scalar_lea.sflag [#allocation6], %s1103_s17 }
 0x492   : > { %1829 = dma.done.wait (%p1426_p11), %s1104_s11, 128  }
 0x493   : > { %1831 = vsyncadd (%p1426_p11), %s1104_s11, 4294967168  ;;  %s1114_s14 = scalar_lea.sflag [#allocation18], %s1103_s17 }
 0x494   : > { %1833 = dma.done.wait (%p1426_p11), %s1114_s14, 512  }
 0x495   : > { %1835 = vsyncadd (%p1426_p11), %s1114_s14, 4294966784  ;;  %s37_s26 = sadd.s32 1, %s2306_s1   ;;  %s2307_s29 = sld [smem:[#allocation29_spill]] }
 0x496   : > { %p34_p12 = scmp.ge.s32.totalorder %s37_s26, 4   ;;  %s2308_s24 = sld [smem:[#allocation26_spill]] }
 0x497   : > { %s2309_s25 = sld [smem:[#allocation28_spill]]  ;;  %s2310_s21 = smov %s1842_s22 }
 0x498   : > { %s2311_s22 = smov %s1846_s23  ;;  %36 = sbr.rel (!%p34_p12) target bundleno = 22 (0x16), region = 173 }
 0x49b   : > { %s2312_s23 = smov %s2307_s29 }
 0x49d   :  { %1120 = vsyncpa [#allocation5], 1 }
 0x49e   :  { %1122 = vsyncpa [#allocation5 + $0x1], 1 }
 0x49f   :  { %1123 = vsyncpa [#allocation8], 1 }
 0x4a0   :  { %1125 = vsyncpa [#allocation8 + $0x1], 1 }
 0x4a1   :  { %1126 = vsyncpa [#allocation11], 1 }
 0x4a2   :  { %1127 = vsyncpa [#allocation14], 1 }
 0x4a3   :  { %1128 = vsyncpa [#allocation6], 1 }
 0x4a4   :  { %1130 = vsyncpa [#allocation6 + $0x1], 1 }
 0x4a5   :  { %1131 = vsyncpa [#allocation18], 1 }
 0x4a6   :  { %1133 = vsyncpa [#allocation18 + $0x1], 1 }

</bundles_post_ra>
